<compile_context>
chip_gen: v6e
topology: v6e:2x2x1
jax: 0.10.0
libtpu: 0.0.40
codegen_flags: <defaults>
</compile_context>

<pallas_src>
import jax
import jax.numpy as jnp
import numpy as np
from jax.experimental import pallas as pl
from jax.experimental.pallas import tpu as pltpu

# ---------------- model hyper-params (small, consistent with the module) ----
BATCH = 8
NUM_FEATURES = 4          # params['num_features']
EMBED_DIM = 16            # params['EmbeddingDim']
EMBED_HID = EMBED_DIM // 2
HD1 = 32                  # params['HD-1']
OUT_DIM = 8               # params['OutDim']
# params['Dropout'] : dropout is identity in eval mode (no RNG needed).
# TODO(synk): training-mode dropout (pltpu.prng_seed + prng_random_bits mask).

LANE = 128
FH = NUM_FEATURES * EMBED_HID      # 32
FE = NUM_FEATURES * EMBED_DIM      # 64
assert FH <= LANE and FE <= LANE and HD1 <= LANE and OUT_DIM <= LANE

# Packed-weight slab layout (bf16).  Big matrices start on 16-sublane (bf16
# native tile) boundaries; biases are single rows.
ROW_W1E = 0                 # rows 0..F-1 : expansion matrix, cols f*H+j hold w1[f, j]
ROW_B1 = 4                  # row 4  : b1 flat   (FH lanes valid)
ROW_B2 = 5                  # row 5  : b2 flat   (FE lanes valid)
ROW_BPRE = 6                # row 6  : b_pre     (HD1 lanes valid)
ROW_BFIN = 7                # row 7  : b_fin     (OUT_DIM lanes valid)
ROW_W2 = 16                 # rows 16..143  : block-diagonal W2 (128x128, zero padded)
ROW_WPRE = 144              # rows 144..271 : w_pre (zero padded)
ROW_WFIN = 272              # rows 272..399 : w_fin (zero padded)
SLAB_ROWS = 400


# ---------------- Pallas kernel --------------------------------------------
def feature_embed_mlp_kernel(x_ref,     # (TB, NUM_FEATURES) f32 raw features
                             w_ref,     # (SLAB_ROWS, 128)   bf16 packed weights
                             out_ref):  # (TB, 128)          f32 lane-dense output
    f32 = jnp.float32
    bf16 = jnp.bfloat16
    x = x_ref[...].astype(bf16)                                     # (TB, F)

    # --- per-feature Linear(1, H), all features via one expansion matmul ---
    h = jnp.dot(x, w_ref[ROW_W1E:ROW_W1E + NUM_FEATURES, :],
                preferred_element_type=f32)
    h = jnp.maximum(h + w_ref[ROW_B1:ROW_B1 + 1, :].astype(f32), 0.0)

    # --- per-feature Linear(H, E) as one block-diagonal matmul, + ReLU ------
    e = jnp.dot(h.astype(bf16), w_ref[ROW_W2:ROW_W2 + LANE, :],
                preferred_element_type=f32)
    e = jnp.maximum(e + w_ref[ROW_B2:ROW_B2 + 1, :].astype(f32), 0.0)

    # --- linear_pre + ReLU --------------------------------------------------
    pre = jnp.dot(e.astype(bf16), w_ref[ROW_WPRE:ROW_WPRE + LANE, :],
                  preferred_element_type=f32)
    pre = jnp.maximum(pre + w_ref[ROW_BPRE:ROW_BPRE + 1, :].astype(f32), 0.0)

    # dropout: eval mode -> identity
    # TODO(synk): training-mode dropout mask with 1/(1-p) scaling.

    # --- linear_final (lane-dense (TB, 128) store) --------------------------
    out = jnp.dot(pre.astype(bf16), w_ref[ROW_WFIN:ROW_WFIN + LANE, :],
                  preferred_element_type=f32)
    out_ref[...] = out + w_ref[ROW_BFIN:ROW_BFIN + 1, :].astype(f32)


# ---------------- host-side weight packing ----------------------------------
def pack_params(p):
    f32 = jnp.float32
    slab = jnp.zeros((SLAB_ROWS, LANE), f32)

    # expansion matrix for layer 1: W1exp[f, f*H + j] = w1[f, j]
    w1e = jnp.zeros((NUM_FEATURES, LANE), f32)
    for f in range(NUM_FEATURES):
        w1e = w1e.at[f, f * EMBED_HID:(f + 1) * EMBED_HID].set(p["w1"][f].astype(f32))
    slab = slab.at[ROW_W1E:ROW_W1E + NUM_FEATURES, :].set(w1e)
    slab = slab.at[ROW_B1, :FH].set(p["b1"].reshape(-1).astype(f32))

    # block-diagonal W2: (F*H, F*E) placed in a (128, 128) zero slab
    w2bd = jnp.zeros((LANE, LANE), f32)
    for f in range(NUM_FEATURES):
        w2bd = w2bd.at[f * EMBED_HID:(f + 1) * EMBED_HID,
                       f * EMBED_DIM:(f + 1) * EMBED_DIM].set(p["w2"][f].astype(f32))
    slab = slab.at[ROW_W2:ROW_W2 + LANE, :].set(w2bd)
    slab = slab.at[ROW_B2, :FE].set(p["b2"].reshape(-1).astype(f32))

    slab = slab.at[ROW_WPRE:ROW_WPRE + FE, :HD1].set(p["w_pre"].astype(f32))
    slab = slab.at[ROW_BPRE, :HD1].set(p["b_pre"][0].astype(f32))

    slab = slab.at[ROW_WFIN:ROW_WFIN + HD1, :OUT_DIM].set(p["w_fin"].astype(f32))
    slab = slab.at[ROW_BFIN, :OUT_DIM].set(p["b_fin"][0].astype(f32))

    return slab.astype(jnp.bfloat16)     # bf16 MXU operands; halves slab DMA


def _round_up(n, m):
    return ((n + m - 1) // m) * m


# ---------------- wrapper ----------------------------------------------------
def feature_embed_mlp(x, slab, *, batch_tile=1024):
    B = x.shape[0]
    x = x.astype(jnp.float32)            # raw (B, F): no repeat / lane-pad passes

    # Batch tiling (sublane multiple of 8).  tb=1024 keeps per-step overhead
    # amortized; total VMEM (x + out double-buffered + 2x 100 KB slab) < 3 MiB
    # on every generation, so no per-chip retiling is needed (incl. v7x 64 MiB).
    tb = min(batch_tile, _round_up(B, 8))
    bp = _round_up(B, tb)
    if bp != B:
        x = jnp.pad(x, ((0, bp - B), (0, 0)))
    grid = (bp // tb,)
    # v7x: at production B (> 2*batch_tile rows) the "parallel" batch axis
    # naturally yields >=2 tiles so both TensorCores get work; at tiny B we
    # deliberately keep grid=(1,) (forcing a split would be pure overhead).

    # 4 bf16 matmuls (one K=4 expansion + three 128x128) + VPU epilogues.
    flops = 2 * bp * LANE * (NUM_FEATURES + 3 * LANE) + 8 * bp * LANE
    bytes_accessed = 4 * bp * NUM_FEATURES + 4 * bp * LANE + 2 * SLAB_ROWS * LANE

    out = pl.pallas_call(
        feature_embed_mlp_kernel,
        out_shape=jax.ShapeDtypeStruct((bp, LANE), jnp.float32),
        grid_spec=pltpu.PrefetchScalarGridSpec(
            num_scalar_prefetch=0,
            grid=grid,
            in_specs=[
                # batch-tiled raw features (last dim == full array dim is legal)
                pl.BlockSpec((tb, NUM_FEATURES), lambda i: (i, 0)),
                # constant block index -> slab DMA'd once, resident across
                # tiles.  Default double-buffering wastes ~100 KB but is kept:
                # a manual program_id==0 load breaks under megacore partitioning.
                pl.BlockSpec((SLAB_ROWS, LANE), lambda i: (0, 0)),
            ],
            out_specs=pl.BlockSpec((tb, LANE), lambda i: (i, 0)),
        ),
        compiler_params=pltpu.CompilerParams(dimension_semantics=("parallel",)),
        cost_estimate=pl.CostEstimate(flops=flops, transcendentals=0,
                                      bytes_accessed=bytes_accessed),
    )(x, slab)

    # NOTE: consumers that can read the padded lane-dense (bp, 128) layout
    # should take `out` directly and fuse this slice into their first op.
    return out[:B, :OUT_DIM]


# ---------------- pure-JAX reference (for verification) --------------------
def ref_forward(x, p):
    embs = []
    for f in range(NUM_FEATURES):
        h = jax.nn.relu(x[:, f:f + 1] * p["w1"][f][None, :] + p["b1"][f][None, :])
        e = h @ p["w2"][f] + p["b2"][f][None, :]
        embs.append(jax.nn.relu(e))
    flat = jnp.concatenate(embs, axis=1)
    pre = jax.nn.relu(flat @ p["w_pre"] + p["b_pre"][0])
    return pre @ p["w_fin"] + p["b_fin"][0]


# ---------------- deterministic parameter init ------------------------------
def init_params(key):
    ks = jax.random.split(key, 9)
    s = 0.1
    return {
        "w1":    s * jax.random.normal(ks[0], (NUM_FEATURES, EMBED_HID), jnp.float32),
        "b1":    s * jax.random.normal(ks[1], (NUM_FEATURES, EMBED_HID), jnp.float32),
        "w2":    s * jax.random.normal(ks[2], (NUM_FEATURES, EMBED_HID, EMBED_DIM), jnp.float32),
        "b2":    s * jax.random.normal(ks[3], (NUM_FEATURES, EMBED_DIM), jnp.float32),
        "w_pre": s * jax.random.normal(ks[4], (NUM_FEATURES * EMBED_DIM, HD1), jnp.float32),
        "b_pre": s * jax.random.normal(ks[5], (1, HD1), jnp.float32),
        "w_fin": s * jax.random.normal(ks[6], (HD1, OUT_DIM), jnp.float32),
        "b_fin": s * jax.random.normal(ks[7], (1, OUT_DIM), jnp.float32),
    }


if __name__ == "__main__":
    key = jax.random.PRNGKey(0)
    pkey, xkey = jax.random.split(key)
    params = init_params(pkey)
    x = jax.random.normal(xkey, (BATCH, NUM_FEATURES), jnp.float32)

    slab = pack_params(params)               # one-time host-side weight packing

    out = feature_embed_mlp(x, slab)
    out = jax.block_until_ready(out)

    ref = ref_forward(x, params)
    # bf16 MXU operands (f32 accumulation) -> relaxed tolerance per review.
    np.testing.assert_allclose(np.asarray(out), np.asarray(ref), rtol=2e-2, atol=2e-2)
    print("KERNEL_OK")
</pallas_src>

<mosaic_0001>
module attributes {stable_mosaic.version = 11 : i64} {
  func.func @feature_embed_mlp_kernel(%arg0: i32, %arg1: memref<8x4xf32, #tpu.memory_space<vmem>>, %arg2: memref<400x128xbf16, #tpu.memory_space<vmem>>, %arg3: memref<8x128xf32, #tpu.memory_space<vmem>>) attributes {dimension_semantics = [#tpu.dimension_semantics<parallel>], iteration_bounds = array<i64: 1>, scalar_prefetch = 0 : i64, scratch_operands = 0 : i64, tpu.core_type = #tpu.core_type<tc>, window_params = [{transform_indices = @transform_0, window_bounds = array<i64: 8, 4>}, {pipeline_mode = #tpu.pipeline_mode<synchronous>, transform_indices = @transform_1, window_bounds = array<i64: 400, 128>}, {transform_indices = @transform_2, window_bounds = array<i64: 8, 128>}]} {
    %c0 = arith.constant 0 : index
    %c0_0 = arith.constant 0 : index
    %0 = vector.load %arg1[%c0, %c0_0] : memref<8x4xf32, #tpu.memory_space<vmem>>, vector<8x4xf32>
    %1 = arith.truncf %0 : vector<8x4xf32> to vector<8x4xbf16>
    %c0_1 = arith.constant 0 : index
    %c0_2 = arith.constant 0 : index
    %2 = vector.load %arg2[%c0_1, %c0_2] : memref<400x128xbf16, #tpu.memory_space<vmem>>, vector<4x128xbf16>
    %cst = arith.constant dense<0.000000e+00> : vector<8x128xf32>
    %3 = tpu.matmul %1, %2, %cst {dimension_numbers = #tpu.dot_dimension_numbers<[1], [0], [0], [1], [0, 0, 1, 1], [], []>} : vector<8x4xbf16>, vector<4x128xbf16>, vector<8x128xf32> -> vector<8x128xf32>
    %c4 = arith.constant 4 : index
    %c0_3 = arith.constant 0 : index
    %4 = vector.load %arg2[%c4, %c0_3] : memref<400x128xbf16, #tpu.memory_space<vmem>>, vector<1x128xbf16>
    %5 = arith.extf %4 : vector<1x128xbf16> to vector<1x128xf32>
    %6 = vector.broadcast %5 : vector<1x128xf32> to vector<8x128xf32>
    %7 = arith.addf %3, %6 : vector<8x128xf32>
    %cst_4 = arith.constant 0.000000e+00 : f32
    %8 = vector.broadcast %cst_4 : f32 to vector<8x128xf32>
    %9 = arith.maximumf %7, %8 : vector<8x128xf32>
    %10 = arith.truncf %9 : vector<8x128xf32> to vector<8x128xbf16>
    %c16 = arith.constant 16 : index
    %c0_5 = arith.constant 0 : index
    %11 = vector.load %arg2[%c16, %c0_5] : memref<400x128xbf16, #tpu.memory_space<vmem>>, vector<128x128xbf16>
    %cst_6 = arith.constant dense<0.000000e+00> : vector<8x128xf32>
    %12 = tpu.matmul %10, %11, %cst_6 {dimension_numbers = #tpu.dot_dimension_numbers<[1], [0], [0], [1], [0, 0, 1, 1], [], []>} : vector<8x128xbf16>, vector<128x128xbf16>, vector<8x128xf32> -> vector<8x128xf32>
    %c5 = arith.constant 5 : index
    %c0_7 = arith.constant 0 : index
    %13 = vector.load %arg2[%c5, %c0_7] : memref<400x128xbf16, #tpu.memory_space<vmem>>, vector<1x128xbf16>
    %14 = arith.extf %13 : vector<1x128xbf16> to vector<1x128xf32>
    %15 = vector.broadcast %14 : vector<1x128xf32> to vector<8x128xf32>
    %16 = arith.addf %12, %15 : vector<8x128xf32>
    %cst_8 = arith.constant 0.000000e+00 : f32
    %17 = vector.broadcast %cst_8 : f32 to vector<8x128xf32>
    %18 = arith.maximumf %16, %17 : vector<8x128xf32>
    %19 = arith.truncf %18 : vector<8x128xf32> to vector<8x128xbf16>
    %c144 = arith.constant 144 : index
    %c0_9 = arith.constant 0 : index
    %20 = vector.load %arg2[%c144, %c0_9] : memref<400x128xbf16, #tpu.memory_space<vmem>>, vector<128x128xbf16>
    %cst_10 = arith.constant dense<0.000000e+00> : vector<8x128xf32>
    %21 = tpu.matmul %19, %20, %cst_10 {dimension_numbers = #tpu.dot_dimension_numbers<[1], [0], [0], [1], [0, 0, 1, 1], [], []>} : vector<8x128xbf16>, vector<128x128xbf16>, vector<8x128xf32> -> vector<8x128xf32>
    %c6 = arith.constant 6 : index
    %c0_11 = arith.constant 0 : index
    %22 = vector.load %arg2[%c6, %c0_11] : memref<400x128xbf16, #tpu.memory_space<vmem>>, vector<1x128xbf16>
    %23 = arith.extf %22 : vector<1x128xbf16> to vector<1x128xf32>
    %24 = vector.broadcast %23 : vector<1x128xf32> to vector<8x128xf32>
    %25 = arith.addf %21, %24 : vector<8x128xf32>
    %cst_12 = arith.constant 0.000000e+00 : f32
    %26 = vector.broadcast %cst_12 : f32 to vector<8x128xf32>
    %27 = arith.maximumf %25, %26 : vector<8x128xf32>
    %28 = arith.truncf %27 : vector<8x128xf32> to vector<8x128xbf16>
    %c272 = arith.constant 272 : index
    %c0_13 = arith.constant 0 : index
    %29 = vector.load %arg2[%c272, %c0_13] : memref<400x128xbf16, #tpu.memory_space<vmem>>, vector<128x128xbf16>
    %cst_14 = arith.constant dense<0.000000e+00> : vector<8x128xf32>
    %30 = tpu.matmul %28, %29, %cst_14 {dimension_numbers = #tpu.dot_dimension_numbers<[1], [0], [0], [1], [0, 0, 1, 1], [], []>} : vector<8x128xbf16>, vector<128x128xbf16>, vector<8x128xf32> -> vector<8x128xf32>
    %c7 = arith.constant 7 : index
    %c0_15 = arith.constant 0 : index
    %31 = vector.load %arg2[%c7, %c0_15] : memref<400x128xbf16, #tpu.memory_space<vmem>>, vector<1x128xbf16>
    %32 = arith.extf %31 : vector<1x128xbf16> to vector<1x128xf32>
    %33 = vector.broadcast %32 : vector<1x128xf32> to vector<8x128xf32>
    %34 = arith.addf %30, %33 : vector<8x128xf32>
    %c0_16 = arith.constant 0 : index
    %c0_17 = arith.constant 0 : index
    %35 = vector.load %arg3[%c0_16, %c0_17] : memref<8x128xf32, #tpu.memory_space<vmem>>, vector<8x128xf32>
    tpu.vector_store %arg3[%c0_16, %c0_17], %34 {strides = array<i32>} : memref<8x128xf32, #tpu.memory_space<vmem>>, vector<8x128xf32>,
    return
  }
  func.func @transform_0(%arg0: i32) -> (i32, i32) {
    %c0_i32 = arith.constant 0 : i32
    %c0_i32_0 = arith.constant 0 : i32
    return %arg0, %c0_i32 : i32, i32
  }
  func.func @transform_1(%arg0: i32) -> (i32, i32) {
    %c0_i32 = arith.constant 0 : i32
    %c0_i32_0 = arith.constant 0 : i32
    %c0_i32_1 = arith.constant 0 : i32
    return %c0_i32, %c0_i32_0 : i32, i32
  }
  func.func @transform_2(%arg0: i32) -> (i32, i32) {
    %c0_i32 = arith.constant 0 : i32
    %c0_i32_0 = arith.constant 0 : i32
    return %arg0, %c0_i32 : i32, i32
  }
}

</mosaic_0001>

<bundles_post_ra>
// kernel: tpu_custom_call.1
= control target key start
LH: loop header
LB: loop body
LE: loop exit
PB: predicated region body
PF: predicated region fallthrough
CT: control target
= control target key end

     0   :  { %7 = vsyncpa [#allocation3], 0  ;;  %s695_s0 = inlined_call_operand.vmem [shape: f32[8,4], index: 0, kind: input, shape index: {}]   ;;  %s696_s1 = inlined_call_operand.hbm [shape: bf16[400,128], index: 1, kind: input, shape index: {}]   ;;  %s697_s2 = inlined_call_operand.hbm [shape: f32[8,128], index: 2, kind: output, shape index: {}]  }
   0x1   :  { %8 = vsyncpa [#allocation4], 0  ;;  %s626_s9 = smov [#allocation2]  }
   0x2   :  { %s16_s10 = sshll.u32 %s626_s9, 4  ;;  %s17_s10 = int_to_ptr.vmem [resolvable:$true] %s16_s10 }
   0x3   :  { %s590_s11 = scalar_lea.vmem %s17_s10, 3200  ;;  %p595_p1 = scmp.lt.s32.totalorder %s17_s10, %s17_s10 }
   0x4   :  { %p591_p0 = scmp.ne.s32.totalorder %s17_s10, %s590_s11  ;;  %p596_p2 = scmp.lt.s32.totalorder %s590_s11, %s590_s11 }
   0x6   :  { %p597_p3 = por %p596_p2, %p595_p1 }
   0x8   :  { %p598_p4 = pnand %p597_p3, %p591_p0 }
   0xa   :  { %601 = shalt.err (!%p598_p4)
}
   0xb   :  { %s627_s12 = smov 64   ;;  %s628_s13 = smov 4  }
   0xc   :  { %22 = dma.hbm_to_vmem [thread:$0]  %s696_s1, 3200, %s17_s10, [#allocation3], %s627_s12, %s627_s12, %s628_s13  }
   0xd   :  { %622 = dma.done.wait [#allocation3], 3200  }
   0xe   :  { %623 = vsyncadd [#allocation3], 4294964096  ;;  %v629_v0 = vmov 0.0   ;;  %vm630_vm0 = vmmov 0   ;;  %vm40_vm1 = vcmask 1041408   ;;  %v27_v2 = vld [vmem:[%s695_s0] sm:$0xff]  ;;  %v32_v19 = vlaneseq }
   0xf   :  { %486 = vmatprep.subr.bf16.mxu0 %v629_v0  ;;  %488 = vmatprep.mubr.msk.bf16.mxu0 %vm630_vm0, %v629_v0  ;;  %v29_v1 = vld [vmem:[#allocation2] sm:$0x3]  ;;  %v28_v4 = vpack.c.bf16 %v27_v2, %v27_v2  ;;  %vm36_vm2 = vcmask 31744   ;;  %v559_v6 = vld [vmem:[#allocation2 + $0x38] sm:$0xff]   ;;  %v560_v7 = vld [vmem:[#allocation2 + $0x30] sm:$0xff]   ;;  %s631_s0 = smov [#allocation5]  }
  0x10   :  { %492 = vmatprep.subr.bf16.mxu1 %v629_v0  ;;  %508 = vmatprep.mubr.msk.bf16.mxu1 %vm630_vm0, %v629_v0  ;;  %v42_v3 = vsel %vm40_vm1, %v29_v1, 0  ;;  %v558_v5 = vld [vmem:[#allocation2 + $0x40] sm:$0xff]   ;;  %v561_v8 = vld [vmem:[#allocation2 + $0x28] sm:$0xff]   ;;  %v563_v10 = vld [vmem:[#allocation2 + $0x18] sm:$0xff]   ;;  %v676_v20 = vshrl.u32 %v32_v19, 7  ;;  %s423_s1 = sshll.u32 %s631_s0, 4  ;;  %s424_s1 = int_to_ptr.vmem [resolvable:$true] %s423_s1 }
  0x11   :  { %487 = vmatpush3.bf16.msra.mxu0 %v42_v3  ;;  %493 = vmatpush3.bf16.msra.mxu1 %v558_v5  ;;  %v562_v9 = vld [vmem:[#allocation2 + $0x20] sm:$0xff]   ;;  %v564_v11 = vld [vmem:[#allocation2 + $0x10] sm:$0xff]   ;;  %v565_v12 = vld [vmem:[#allocation2 + $0x8] sm:$0xff]   ;;  %s602_s18 = scalar_lea.vmem %s424_s1, 128  ;;  %p607_p6 = scmp.lt.s32.totalorder %s424_s1, %s424_s1 }
  0x12   :  { %512 = vmatprep.subr.bf16.mxu0 %v629_v0  ;;  %494 = vmatprep.subr.bf16.mxu1 %v629_v0  ;;  %v566_v13 = vld [vmem:[#allocation2 + $0x80] sm:$0xff]   ;;  %v567_v14 = vld [vmem:[#allocation2 + $0x78] sm:$0xff]   ;;  %v568_v15 = vld [vmem:[#allocation2 + $0x70] sm:$0xff]   ;;  %v34_v23 = vsub.s32 4, %v676_v20  ;;  %v104_v40 = vsub.s32 5, %v676_v20  ;;  %v216_v53 = vsub.s32 6, %v676_v20  ;;  %p603_p5 = scmp.ne.s32.totalorder %s424_s1, %s602_s18  ;;  %p608_p7 = scmp.lt.s32.totalorder %s602_s18, %s602_s18 }
  0x13   :  { %v569_v16 = vld [vmem:[#allocation2 + $0x68] sm:$0xff]   ;;  %v570_v17 = vld [vmem:[#allocation2 + $0x60] sm:$0xff]   ;;  %v571_v18 = vld [vmem:[#allocation2 + $0x58] sm:$0xff]   ;;  %v326_v62 = vsub.s32 7, %v676_v20 }
  0x14   :  { %489 = vmatmul.mubr.msk.bf16.vlgmr.msra.gmra.mxu0 %vm36_vm2, %v28_v4  ;;  %v30_v21 = vld [vmem:[#allocation2] sm:$0x4]  ;;  %v572_v32 = vld [vmem:[#allocation2 + $0x50] sm:$0xff]   ;;  %v573_v33 = vld [vmem:[#allocation2 + $0x48] sm:$0xff]   ;;  %p609_p8 = por %p608_p7, %p607_p6 }
  0x15   :  { %528 = vmatprep.mubr.msk.bf16.mxu0 %vm630_vm0, %v629_v0  ;;  %495 = vmatpush3.bf16.msra.mxu1 %v559_v6  ;;  %v31_v22 = vunpack.c.l.bf16 %v30_v21  ;;  %v574_v34 = vld [vmem:[#allocation2 + $0xc0] sm:$0xff]   ;;  %v575_v35 = vld [vmem:[#allocation2 + $0xb8] sm:$0xff]   ;;  %v576_v36 = vld [vmem:[#allocation2 + $0xb0] sm:$0xff]  }
  0x16   :  { %496 = vmatprep.subr.bf16.mxu1 %v629_v0  ;;  %513 = vmatpush3.bf16.msra.mxu0 %v566_v13  ;;  %v577_v37 = vld [vmem:[#allocation2 + $0xa8] sm:$0xff]   ;;  %v578_v38 = vld [vmem:[#allocation2 + $0xa0] sm:$0xff]   ;;  %v579_v39 = vld [vmem:[#allocation2 + $0x98] sm:$0xff]   ;;  %p610_p9 = pnand %p609_p8, %p603_p5 }
  0x17   :  { %514 = vmatprep.subr.bf16.mxu0 %v629_v0  ;;  %v35_v24 = vrot.slane %v31_v22, %v34_v23  ;;  %v105_v41 = vrot.slane %v31_v22, %v104_v40  ;;  %v580_v49 = vld [vmem:[#allocation2 + $0x90] sm:$0xff]   ;;  %v581_v50 = vld [vmem:[#allocation2 + $0x88] sm:$0xff]   ;;  %v212_v51 = vld [vmem:[#allocation2] sm:$0x8] }
  0x18   :  { %v213_v52 = vunpack.c.l.bf16 %v212_v51 }
  0x19   :  { %497 = vmatpush3.bf16.msra.mxu1 %v560_v7 }
  0x1a   :  { %498 = vmatprep.subr.bf16.mxu1 %v629_v0  ;;  %515 = vmatpush3.bf16.msra.mxu0 %v567_v14  ;;  %v217_v54 = vrot.slane %v213_v52, %v216_v53  ;;  %v327_v63 = vrot.slane %v213_v52, %v326_v62 }
  0x1b   :  { %516 = vmatprep.subr.bf16.mxu0 %v629_v0 }
  0x1d   :  { %499 = vmatpush3.bf16.msra.mxu1 %v561_v8 }
  0x1e   :  { %500 = vmatprep.subr.bf16.mxu1 %v629_v0  ;;  %517 = vmatpush3.bf16.msra.mxu0 %v568_v15 }
  0x1f   :  { %518 = vmatprep.subr.bf16.mxu0 %v629_v0 }
  0x21   :  { %501 = vmatpush3.bf16.msra.mxu1 %v562_v9 }
  0x22   :  { %502 = vmatprep.subr.bf16.mxu1 %v629_v0  ;;  %519 = vmatpush3.bf16.msra.mxu0 %v569_v16 }
  0x23   :  { %520 = vmatprep.subr.bf16.mxu0 %v629_v0 }
  0x25   :  { %503 = vmatpush3.bf16.msra.mxu1 %v563_v10 }
  0x26   :  { %504 = vmatprep.subr.bf16.mxu1 %v629_v0  ;;  %521 = vmatpush3.bf16.msra.mxu0 %v570_v17 }
  0x27   :  { %522 = vmatprep.subr.bf16.mxu0 %v629_v0 }
  0x29   :  { %505 = vmatpush3.bf16.msra.mxu1 %v564_v11 }
  0x2a   :  { %506 = vmatprep.subr.bf16.mxu1 %v629_v0  ;;  %523 = vmatpush3.bf16.msra.mxu0 %v571_v18 }
  0x2b   :  { %524 = vmatprep.subr.bf16.mxu0 %v629_v0 }
  0x2d   :  { %507 = vmatpush3.bf16.msra.mxu1 %v565_v12 }
  0x2e   :  { %532 = vmatprep.subr.bf16.mxu1 %v629_v0  ;;  %525 = vmatpush3.bf16.msra.mxu0 %v572_v32 }
  0x2f   :  { %526 = vmatprep.subr.bf16.mxu0 %v629_v0 }
  0x32   :  { %527 = vmatpush3.bf16.msra.mxu0 %v573_v33 }
  0xd4   :  { %v78_v25 = vpop.f32.mrf.mxu0 }
  0xd5   :  { %v79_v26 = vadd.f32 %v78_v25, %v35_v24 }
  0xd6   :  { %v490_v27 = vpop.f32.mrf.mxu0 }
  0xd7   :  { %v84_v28 = vmax.f32 %v79_v26, 0.0 }
  0xd8   :  { %v81_v29 = vpop.f32.mrf.mxu0 }
  0xd9   :  { %v85_v30 = vpack.c.bf16 %v84_v28, %v84_v28 }
  0xda   :  { %v491_v31 = vpop.f32.mrf.mxu0 }
  0xdb   :  { %509 = vmatmul.mubr.bf16.vlgmr.msra.gmra.mxu1 %v85_v30 }
  0xdc   :  { %548 = vmatprep.mubr.msk.bf16.mxu1 %vm630_vm0, %v629_v0  ;;  %533 = vmatpush3.bf16.msra.mxu1 %v574_v34 }
  0xdd   :  { %534 = vmatprep.subr.bf16.mxu1 %v629_v0 }
  0xe0   :  { %535 = vmatpush3.bf16.msra.mxu1 %v575_v35 }
  0xe1   :  { %536 = vmatprep.subr.bf16.mxu1 %v629_v0 }
  0xe4   :  { %537 = vmatpush3.bf16.msra.mxu1 %v576_v36 }
  0xe5   :  { %538 = vmatprep.subr.bf16.mxu1 %v629_v0 }
  0xe8   :  { %539 = vmatpush3.bf16.msra.mxu1 %v577_v37 }
  0xe9   :  { %540 = vmatprep.subr.bf16.mxu1 %v629_v0 }
  0xec   :  { %541 = vmatpush3.bf16.msra.mxu1 %v578_v38 }
  0xed   :  { %542 = vmatprep.subr.bf16.mxu1 %v629_v0 }
  0xf0   :  { %543 = vmatpush3.bf16.msra.mxu1 %v579_v39 }
  0xf1   :  { %544 = vmatprep.subr.bf16.mxu1 %v629_v0 }
  0xf4   :  { %545 = vmatpush3.bf16.msra.mxu1 %v580_v49 }
  0xf5   :  { %546 = vmatprep.subr.bf16.mxu1 %v629_v0 }
  0xf8   :  { %547 = vmatpush3.bf16.msra.mxu1 %v581_v50 }
 0x19b   :  { %v188_v42 = vpop.f32.mrf.mxu1 }
 0x19c   :  { %v189_v43 = vadd.f32 %v188_v42, %v105_v41 }
 0x19d   :  { %v510_v44 = vpop.f32.mrf.mxu1 }
 0x19e   :  { %v194_v45 = vmax.f32 %v189_v43, 0.0 }
 0x19f   :  { %v191_v46 = vpop.f32.mrf.mxu1 }
 0x1a0   :  { %v195_v47 = vpack.c.bf16 %v194_v45, %v194_v45 }
 0x1a1   :  { %v511_v48 = vpop.f32.mrf.mxu1 }
 0x1a2   :  { %529 = vmatmul.mubr.bf16.vlgmr.msra.gmra.mxu0 %v195_v47 }
 0x262   :  { %v300_v55 = vpop.f32.mrf.mxu0 }
 0x263   :  { %v301_v56 = vadd.f32 %v300_v55, %v217_v54 }
 0x264   :  { %v530_v57 = vpop.f32.mrf.mxu0 }
 0x265   :  { %v306_v58 = vmax.f32 %v301_v56, 0.0 }
 0x266   :  { %v303_v59 = vpop.f32.mrf.mxu0 }
 0x267   :  { %v307_v60 = vpack.c.bf16 %v306_v58, %v306_v58 }
 0x268   :  { %v531_v61 = vpop.f32.mrf.mxu0 }
 0x269   :  { %549 = vmatmul.mubr.bf16.vlgmr.msra.gmra.mxu1 %v307_v60 }
 0x329   :  { %v410_v0 = vpop.f32.mrf.mxu1 }
 0x32a   :  { %v411_v1 = vadd.f32 %v410_v0, %v327_v63 }
 0x32b   :  { %v550_v2 = vpop.f32.mrf.mxu1 }
 0x32c   :  { %416 = vst [vmem:[#allocation5] sm:$0xff] %v411_v1 }
 0x32d   :  { %v413_v3 = vpop.f32.mrf.mxu1 }
 0x32e   :  { %613 = shalt.err (!%p610_p9)
}
 0x32f   :  { %426 = dma.vmem_to_hbm [thread:$0]  %s424_s1, 128, %s697_s2, [#allocation4]   ;;  %v551_v4 = vpop.f32.mrf.mxu1 }
 0x330   :  { %624 = dma.done.wait [#allocation4], 128  }
 0x331   :  { %625 = vsyncadd [#allocation4], 4294967168 }
 0x332   :  { %430 = vsyncpa [#allocation3], 1 }
 0x333   :  { %431 = vsyncpa [#allocation4], 1 }

</bundles_post_ra>
